<compile_context>
chip_gen: v7x
topology: tpu7x:2x2x1
jax: 0.10.0
libtpu: 0.0.40
codegen_flags: <defaults>
</compile_context>

<pallas_src>
import jax
import jax.numpy as jnp
from jax import lax
from jax.experimental import pallas as pl
from jax.experimental.pallas import tpu as pltpu


def _round_up(x, m):
    return ((x + m - 1) // m) * m


# ----------------------------- Pallas kernel --------------------------------
def _mlp_kernel(noise_ref, e1_ref, e2_ref,
                w1n, w1e1, w1e2, b1,
                w2, b2, w3, b3, w4, b4, w5, b5,
                w6, b6,
                o_ref):
    f32 = jnp.float32
    bf16 = jnp.bfloat16

    def lrelu(v):                       # f32 in, f32 out
        return jnp.where(v > 0, v, 0.2 * v)

    def dot(a, b):                      # bf16 x bf16 -> f32 accumulation on MXU
        return jnp.dot(a, b, preferred_element_type=f32)

    # ---- layer 1: concat([noise, e1, e2]) @ W1 done as 3 partial matmuls ----
    a1 = (dot(noise_ref[...], w1n[...])
          + dot(e1_ref[...], w1e1[...])
          + dot(e2_ref[...], w1e2[...])
          + b1[...])
    h = lrelu(a1).astype(bf16)

    # ---- layers 2-5 ----
    h = lrelu(dot(h, w2[...]) + b2[...]).astype(bf16)
    h = lrelu(dot(h, w3[...]) + b3[...]).astype(bf16)
    h = lrelu(dot(h, w4[...]) + b4[...]).astype(bf16)
    h = lrelu(dot(h, w5[...]) + b5[...]).astype(bf16)

    # ---- layer 6: Linear(128,1) + Sigmoid, lane-dense output (1, tile_m) ----
    # z[0, m] = sum_k w6[0, k] * h[m, k]   (batch ends up on the lane axis)
    z = lax.dot_general(w6[...], h,
                        dimension_numbers=(((1,), (1,)), ((), ())),
                        preferred_element_type=f32) + b6[...]     # (1, tile_m)
    o_ref[0] = 1.0 / (1.0 + jnp.exp(-z))                          # Sigmoid (f32)


# ----------------------------- kernel wrapper --------------------------------
def generator_mlp(noise, e1, e2, params, *, tile_m_target=512):
    """Runs the Generator MLP on (noise, emb(label1), emb(label2))."""
    B, noise_dim = noise.shape
    label_dim = e1.shape[1]
    bf16 = jnp.bfloat16

    (w1, b1), (w2, b2), (w3, b3), (w4, b4), (w5, b5), (w6, b6) = params

    # Split W1 so the concat never has to be materialised in HBM.
    w1n = w1[:noise_dim]
    w1e1 = w1[noise_dim:noise_dim + label_dim]
    w1e2 = w1[noise_dim + label_dim:]

    weights = [
        w1n.astype(bf16), w1e1.astype(bf16), w1e2.astype(bf16),
        b1.astype(jnp.float32),
        w2.astype(bf16), b2.astype(jnp.float32),
        w3.astype(bf16), b3.astype(jnp.float32),
        w4.astype(bf16), b4.astype(jnp.float32),
        w5.astype(bf16), b5.astype(jnp.float32),
        w6.T.astype(bf16),                       # (1, 128)
        b6.reshape(1, 1).astype(jnp.float32),    # (1, 1)
    ]

    # Batch tiling: big MXU-friendly tiles; whole batch in one step if small.
    if B <= tile_m_target:
        tile_m = _round_up(B, 8)
    else:
        tile_m = tile_m_target
    num_tiles = pl.cdiv(B, tile_m)
    b_pad = num_tiles * tile_m

    def prep(x):
        x = x.astype(bf16)
        if b_pad != B:
            x = jnp.pad(x, ((0, b_pad - B), (0, 0)))
        return x

    noise_p, e1_p, e2_p = prep(noise), prep(e1), prep(e2)

    def act_spec(d):
        return pl.BlockSpec((tile_m, d), lambda i: (i, 0))

    def full_spec(arr):
        # Constant index_map: the weight tile is fetched once and stays
        # resident in VMEM across the whole batch grid.
        return pl.BlockSpec(arr.shape, lambda i, _r=arr.ndim: (0,) * _r)

    in_specs = [act_spec(noise_dim), act_spec(label_dim), act_spec(label_dim)]
    in_specs += [full_spec(w) for w in weights]

    # Lane-dense output: (num_tiles, 1, tile_m), batch on the lane axis.
    out_spec = pl.BlockSpec((1, 1, tile_m), lambda i: (i, 0, 0))

    out = pl.pallas_call(
        _mlp_kernel,
        out_shape=jax.ShapeDtypeStruct((num_tiles, 1, tile_m), jnp.float32),
        grid_spec=pltpu.PrefetchScalarGridSpec(
            num_scalar_prefetch=0,
            grid=(num_tiles,),
            in_specs=in_specs,
            out_specs=out_spec,
        ),
        compiler_params=pltpu.CompilerParams(
            dimension_semantics=("parallel",)),
    )(noise_p, e1_p, e2_p, *weights)

    return out.reshape(b_pad, 1)[:B]


# ----------------------------- Parameter setup -------------------------------
def init_generator_params(key, in_channels, label_dim, n_classes):
    """Deterministic synthetic weights (shapes match the PyTorch module)."""
    dims = [in_channels, 128, 256, 512, 256, 128, 1]
    params = []
    keys = jax.random.split(key, len(dims))
    for li in range(len(dims) - 1):
        kw, kb = jax.random.split(keys[li])
        scale = 1.0 / jnp.sqrt(jnp.float32(dims[li]))
        w = jax.random.uniform(kw, (dims[li], dims[li + 1]),
                               minval=-scale, maxval=scale, dtype=jnp.float32)
        b = jax.random.uniform(kb, (1, dims[li + 1]),
                               minval=-scale, maxval=scale, dtype=jnp.float32)
        params.append((w, b))
    emb = jax.random.normal(keys[-1], (n_classes, label_dim), dtype=jnp.float32)
    return emb, params


def generator_forward(noise, label1, label2, emb, params):
    # glue: embedding lookup (nn.Embedding) as a plain JAX gather
    e1 = emb[label1.astype(jnp.int32)]
    e2 = emb[label2.astype(jnp.int32)]
    return generator_mlp(noise.astype(jnp.float32), e1, e2, params)


# --------------------------------- main --------------------------------------
if __name__ == "__main__":
    # small config consistent with the module:
    #   student.lin.weight.size(1) = 16, latent_dim = 8, label_dim = 8,
    #   n_classes = 10 -> noise dim = 16 + 2*8 = 32, in_channels = 32 + 2*8 = 48
    STUDENT_IN = 16
    LATENT_DIM = 8
    LABEL_DIM = 8
    N_CLASSES = 10
    BATCH = 16

    noise_dim = STUDENT_IN + 2 * LATENT_DIM
    in_channels = noise_dim + 2 * LABEL_DIM

    key = jax.random.PRNGKey(0)
    k_par, k_noise, k_l1, k_l2 = jax.random.split(key, 4)

    emb, params = init_generator_params(k_par, in_channels, LABEL_DIM, N_CLASSES)

    noise = jax.random.normal(k_noise, (BATCH, noise_dim), dtype=jnp.float32)
    label1 = jax.random.randint(k_l1, (BATCH,), 0, N_CLASSES, dtype=jnp.int32)
    label2 = jax.random.randint(k_l2, (BATCH,), 0, N_CLASSES, dtype=jnp.int32)

    out = generator_forward(noise, label1, label2, emb, params)
    out = jax.block_until_ready(out)

    # pure-JAX reference mirroring the kernel's bf16 weight/activation math
    def ref_forward(noise, label1, label2):
        x = jnp.concatenate([noise, emb[label1], emb[label2]], axis=-1)
        h = x.astype(jnp.bfloat16)
        for i, (w, b) in enumerate(params):
            a = jnp.dot(h, w.astype(jnp.bfloat16),
                        preferred_element_type=jnp.float32) + b
            if i < len(params) - 1:
                h = jnp.where(a > 0, a, 0.2 * a).astype(jnp.bfloat16)
            else:
                h = jax.nn.sigmoid(a)
        return h

    ref = ref_forward(noise, label1, label2)
    assert out.shape == (BATCH, 1)
    assert jnp.allclose(out, ref, atol=2e-2, rtol=2e-2), (
        float(jnp.max(jnp.abs(out - ref))))

    print("KERNEL_OK")
</pallas_src>

<mosaic_0001>
module attributes {stable_mosaic.version = 11 : i64} {
  func.func @_mlp_kernel(%arg0: i32, %arg1: memref<16x32xbf16, #tpu.memory_space<vmem>>, %arg2: memref<16x8xbf16, #tpu.memory_space<vmem>>, %arg3: memref<16x8xbf16, #tpu.memory_space<vmem>>, %arg4: memref<32x128xbf16, #tpu.memory_space<vmem>>, %arg5: memref<8x128xbf16, #tpu.memory_space<vmem>>, %arg6: memref<8x128xbf16, #tpu.memory_space<vmem>>, %arg7: memref<1x128xf32, #tpu.memory_space<vmem>>, %arg8: memref<128x256xbf16, #tpu.memory_space<vmem>>, %arg9: memref<1x256xf32, #tpu.memory_space<vmem>>, %arg10: memref<256x512xbf16, #tpu.memory_space<vmem>>, %arg11: memref<1x512xf32, #tpu.memory_space<vmem>>, %arg12: memref<512x256xbf16, #tpu.memory_space<vmem>>, %arg13: memref<1x256xf32, #tpu.memory_space<vmem>>, %arg14: memref<256x128xbf16, #tpu.memory_space<vmem>>, %arg15: memref<1x128xf32, #tpu.memory_space<vmem>>, %arg16: memref<1x128xbf16, #tpu.memory_space<vmem>>, %arg17: memref<1x1xf32, #tpu.memory_space<vmem>>, %arg18: memref<1x1x16xf32, #tpu.memory_space<vmem>>) attributes {dimension_semantics = [#tpu.dimension_semantics<parallel>], iteration_bounds = array<i64: 1>, scalar_prefetch = 0 : i64, scratch_operands = 0 : i64, tpu.core_type = #tpu.core_type<tc>, window_params = [{transform_indices = @transform_0, window_bounds = array<i64: 16, 32>}, {transform_indices = @transform_1, window_bounds = array<i64: 16, 8>}, {transform_indices = @transform_2, window_bounds = array<i64: 16, 8>}, {pipeline_mode = #tpu.pipeline_mode<synchronous>, transform_indices = @transform_3, window_bounds = array<i64: 32, 128>}, {pipeline_mode = #tpu.pipeline_mode<synchronous>, transform_indices = @transform_4, window_bounds = array<i64: 8, 128>}, {pipeline_mode = #tpu.pipeline_mode<synchronous>, transform_indices = @transform_5, window_bounds = array<i64: 8, 128>}, {pipeline_mode = #tpu.pipeline_mode<synchronous>, transform_indices = @transform_6, window_bounds = array<i64: 1, 128>}, {pipeline_mode = #tpu.pipeline_mode<synchronous>, transform_indices = @transform_7, window_bounds = array<i64: 128, 256>}, {pipeline_mode = #tpu.pipeline_mode<synchronous>, transform_indices = @transform_8, window_bounds = array<i64: 1, 256>}, {pipeline_mode = #tpu.pipeline_mode<synchronous>, transform_indices = @transform_9, window_bounds = array<i64: 256, 512>}, {pipeline_mode = #tpu.pipeline_mode<synchronous>, transform_indices = @transform_10, window_bounds = array<i64: 1, 512>}, {pipeline_mode = #tpu.pipeline_mode<synchronous>, transform_indices = @transform_11, window_bounds = array<i64: 512, 256>}, {pipeline_mode = #tpu.pipeline_mode<synchronous>, transform_indices = @transform_12, window_bounds = array<i64: 1, 256>}, {pipeline_mode = #tpu.pipeline_mode<synchronous>, transform_indices = @transform_13, window_bounds = array<i64: 256, 128>}, {pipeline_mode = #tpu.pipeline_mode<synchronous>, transform_indices = @transform_14, window_bounds = array<i64: 1, 128>}, {pipeline_mode = #tpu.pipeline_mode<synchronous>, transform_indices = @transform_15, window_bounds = array<i64: 1, 128>}, {pipeline_mode = #tpu.pipeline_mode<synchronous>, transform_indices = @transform_16, window_bounds = array<i64: 1, 1>}, {transform_indices = @transform_17, window_bounds = array<i64: 1, 1, 16>}]} {
    %c0 = arith.constant 0 : index
    %c0_0 = arith.constant 0 : index
    %0 = vector.load %arg1[%c0, %c0_0] : memref<16x32xbf16, #tpu.memory_space<vmem>>, vector<16x32xbf16>
    %c0_1 = arith.constant 0 : index
    %c0_2 = arith.constant 0 : index
    %1 = vector.load %arg4[%c0_1, %c0_2] : memref<32x128xbf16, #tpu.memory_space<vmem>>, vector<32x128xbf16>
    %cst = arith.constant dense<0.000000e+00> : vector<16x128xf32>
    %2 = tpu.matmul %0, %1, %cst {dimension_numbers = #tpu.dot_dimension_numbers<[1], [0], [0], [1], [0, 0, 1, 1], [], []>} : vector<16x32xbf16>, vector<32x128xbf16>, vector<16x128xf32> -> vector<16x128xf32>
    %c0_3 = arith.constant 0 : index
    %c0_4 = arith.constant 0 : index
    %3 = vector.load %arg2[%c0_3, %c0_4] : memref<16x8xbf16, #tpu.memory_space<vmem>>, vector<16x8xbf16>
    %c0_5 = arith.constant 0 : index
    %c0_6 = arith.constant 0 : index
    %4 = vector.load %arg5[%c0_5, %c0_6] : memref<8x128xbf16, #tpu.memory_space<vmem>>, vector<8x128xbf16>
    %cst_7 = arith.constant dense<0.000000e+00> : vector<16x128xf32>
    %5 = tpu.matmul %3, %4, %cst_7 {dimension_numbers = #tpu.dot_dimension_numbers<[1], [0], [0], [1], [0, 0, 1, 1], [], []>} : vector<16x8xbf16>, vector<8x128xbf16>, vector<16x128xf32> -> vector<16x128xf32>
    %6 = arith.addf %2, %5 : vector<16x128xf32>
    %c0_8 = arith.constant 0 : index
    %c0_9 = arith.constant 0 : index
    %7 = vector.load %arg3[%c0_8, %c0_9] : memref<16x8xbf16, #tpu.memory_space<vmem>>, vector<16x8xbf16>
    %c0_10 = arith.constant 0 : index
    %c0_11 = arith.constant 0 : index
    %8 = vector.load %arg6[%c0_10, %c0_11] : memref<8x128xbf16, #tpu.memory_space<vmem>>, vector<8x128xbf16>
    %cst_12 = arith.constant dense<0.000000e+00> : vector<16x128xf32>
    %9 = tpu.matmul %7, %8, %cst_12 {dimension_numbers = #tpu.dot_dimension_numbers<[1], [0], [0], [1], [0, 0, 1, 1], [], []>} : vector<16x8xbf16>, vector<8x128xbf16>, vector<16x128xf32> -> vector<16x128xf32>
    %10 = arith.addf %6, %9 : vector<16x128xf32>
    %c0_13 = arith.constant 0 : index
    %c0_14 = arith.constant 0 : index
    %11 = vector.load %arg7[%c0_13, %c0_14] : memref<1x128xf32, #tpu.memory_space<vmem>>, vector<1x128xf32>
    %12 = vector.broadcast %11 : vector<1x128xf32> to vector<16x128xf32>
    %13 = arith.addf %10, %12 : vector<16x128xf32>
    %cst_15 = arith.constant 0.000000e+00 : f32
    %14 = vector.broadcast %cst_15 : f32 to vector<16x128xf32>
    %15 = arith.cmpf ogt, %13, %14 : vector<16x128xf32>
    %cst_16 = arith.constant 2.000000e-01 : f32
    %16 = vector.broadcast %cst_16 : f32 to vector<16x128xf32>
    %17 = arith.mulf %16, %13 : vector<16x128xf32>
    %18 = arith.select %15, %13, %17 : vector<16x128xi1>, vector<16x128xf32>
    %19 = arith.truncf %18 : vector<16x128xf32> to vector<16x128xbf16>
    %c0_17 = arith.constant 0 : index
    %c0_18 = arith.constant 0 : index
    %20 = vector.load %arg8[%c0_17, %c0_18] : memref<128x256xbf16, #tpu.memory_space<vmem>>, vector<128x256xbf16>
    %cst_19 = arith.constant dense<0.000000e+00> : vector<16x256xf32>
    %21 = tpu.matmul %19, %20, %cst_19 {dimension_numbers = #tpu.dot_dimension_numbers<[1], [0], [0], [1], [0, 0, 1, 1], [], []>} : vector<16x128xbf16>, vector<128x256xbf16>, vector<16x256xf32> -> vector<16x256xf32>
    %c0_20 = arith.constant 0 : index
    %c0_21 = arith.constant 0 : index
    %22 = vector.load %arg9[%c0_20, %c0_21] : memref<1x256xf32, #tpu.memory_space<vmem>>, vector<1x256xf32>
    %23 = vector.broadcast %22 : vector<1x256xf32> to vector<16x256xf32>
    %24 = arith.addf %21, %23 : vector<16x256xf32>
    %cst_22 = arith.constant 0.000000e+00 : f32
    %25 = vector.broadcast %cst_22 : f32 to vector<16x256xf32>
    %26 = arith.cmpf ogt, %24, %25 : vector<16x256xf32>
    %cst_23 = arith.constant 2.000000e-01 : f32
    %27 = vector.broadcast %cst_23 : f32 to vector<16x256xf32>
    %28 = arith.mulf %27, %24 : vector<16x256xf32>
    %29 = arith.select %26, %24, %28 : vector<16x256xi1>, vector<16x256xf32>
    %30 = arith.truncf %29 : vector<16x256xf32> to vector<16x256xbf16>
    %c0_24 = arith.constant 0 : index
    %c0_25 = arith.constant 0 : index
    %31 = vector.load %arg10[%c0_24, %c0_25] : memref<256x512xbf16, #tpu.memory_space<vmem>>, vector<256x512xbf16>
    %cst_26 = arith.constant dense<0.000000e+00> : vector<16x512xf32>
    %32 = tpu.matmul %30, %31, %cst_26 {dimension_numbers = #tpu.dot_dimension_numbers<[1], [0], [0], [1], [0, 0, 1, 1], [], []>} : vector<16x256xbf16>, vector<256x512xbf16>, vector<16x512xf32> -> vector<16x512xf32>
    %c0_27 = arith.constant 0 : index
    %c0_28 = arith.constant 0 : index
    %33 = vector.load %arg11[%c0_27, %c0_28] : memref<1x512xf32, #tpu.memory_space<vmem>>, vector<1x512xf32>
    %34 = vector.broadcast %33 : vector<1x512xf32> to vector<16x512xf32>
    %35 = arith.addf %32, %34 : vector<16x512xf32>
    %cst_29 = arith.constant 0.000000e+00 : f32
    %36 = vector.broadcast %cst_29 : f32 to vector<16x512xf32>
    %37 = arith.cmpf ogt, %35, %36 : vector<16x512xf32>
    %cst_30 = arith.constant 2.000000e-01 : f32
    %38 = vector.broadcast %cst_30 : f32 to vector<16x512xf32>
    %39 = arith.mulf %38, %35 : vector<16x512xf32>
    %40 = arith.select %37, %35, %39 : vector<16x512xi1>, vector<16x512xf32>
    %41 = arith.truncf %40 : vector<16x512xf32> to vector<16x512xbf16>
    %c0_31 = arith.constant 0 : index
    %c0_32 = arith.constant 0 : index
    %42 = vector.load %arg12[%c0_31, %c0_32] : memref<512x256xbf16, #tpu.memory_space<vmem>>, vector<512x256xbf16>
    %cst_33 = arith.constant dense<0.000000e+00> : vector<16x256xf32>
    %43 = tpu.matmul %41, %42, %cst_33 {dimension_numbers = #tpu.dot_dimension_numbers<[1], [0], [0], [1], [0, 0, 1, 1], [], []>} : vector<16x512xbf16>, vector<512x256xbf16>, vector<16x256xf32> -> vector<16x256xf32>
    %c0_34 = arith.constant 0 : index
    %c0_35 = arith.constant 0 : index
    %44 = vector.load %arg13[%c0_34, %c0_35] : memref<1x256xf32, #tpu.memory_space<vmem>>, vector<1x256xf32>
    %45 = vector.broadcast %44 : vector<1x256xf32> to vector<16x256xf32>
    %46 = arith.addf %43, %45 : vector<16x256xf32>
    %cst_36 = arith.constant 0.000000e+00 : f32
    %47 = vector.broadcast %cst_36 : f32 to vector<16x256xf32>
    %48 = arith.cmpf ogt, %46, %47 : vector<16x256xf32>
    %cst_37 = arith.constant 2.000000e-01 : f32
    %49 = vector.broadcast %cst_37 : f32 to vector<16x256xf32>
    %50 = arith.mulf %49, %46 : vector<16x256xf32>
    %51 = arith.select %48, %46, %50 : vector<16x256xi1>, vector<16x256xf32>
    %52 = arith.truncf %51 : vector<16x256xf32> to vector<16x256xbf16>
    %c0_38 = arith.constant 0 : index
    %c0_39 = arith.constant 0 : index
    %53 = vector.load %arg14[%c0_38, %c0_39] : memref<256x128xbf16, #tpu.memory_space<vmem>>, vector<256x128xbf16>
    %cst_40 = arith.constant dense<0.000000e+00> : vector<16x128xf32>
    %54 = tpu.matmul %52, %53, %cst_40 {dimension_numbers = #tpu.dot_dimension_numbers<[1], [0], [0], [1], [0, 0, 1, 1], [], []>} : vector<16x256xbf16>, vector<256x128xbf16>, vector<16x128xf32> -> vector<16x128xf32>
    %c0_41 = arith.constant 0 : index
    %c0_42 = arith.constant 0 : index
    %55 = vector.load %arg15[%c0_41, %c0_42] : memref<1x128xf32, #tpu.memory_space<vmem>>, vector<1x128xf32>
    %56 = vector.broadcast %55 : vector<1x128xf32> to vector<16x128xf32>
    %57 = arith.addf %54, %56 : vector<16x128xf32>
    %cst_43 = arith.constant 0.000000e+00 : f32
    %58 = vector.broadcast %cst_43 : f32 to vector<16x128xf32>
    %59 = arith.cmpf ogt, %57, %58 : vector<16x128xf32>
    %cst_44 = arith.constant 2.000000e-01 : f32
    %60 = vector.broadcast %cst_44 : f32 to vector<16x128xf32>
    %61 = arith.mulf %60, %57 : vector<16x128xf32>
    %62 = arith.select %59, %57, %61 : vector<16x128xi1>, vector<16x128xf32>
    %63 = arith.truncf %62 : vector<16x128xf32> to vector<16x128xbf16>
    %c0_45 = arith.constant 0 : index
    %c0_46 = arith.constant 0 : index
    %64 = vector.load %arg16[%c0_45, %c0_46] : memref<1x128xbf16, #tpu.memory_space<vmem>>, vector<1x128xbf16>
    %cst_47 = arith.constant dense<0.000000e+00> : vector<1x16xf32>
    %65 = tpu.matmul %64, %63, %cst_47 {dimension_numbers = #tpu.dot_dimension_numbers<[1], [1], [0], [0], [0, 0, 1, 0], [], []>} : vector<1x128xbf16>, vector<16x128xbf16>, vector<1x16xf32> -> vector<1x16xf32>
    %c0_48 = arith.constant 0 : index
    %c0_49 = arith.constant 0 : index
    %66 = vector.load %arg17[%c0_48, %c0_49] : memref<1x1xf32, #tpu.memory_space<vmem>>, vector<1x1xf32>
    %67 = vector.broadcast %66 : vector<1x1xf32> to vector<1x16xf32>
    %68 = arith.addf %65, %67 : vector<1x16xf32>
    %cst_50 = arith.constant 0.000000e+00 : f32
    %69 = vector.broadcast %cst_50 : f32 to vector<1x16xf32>
    %70 = arith.subf %69, %68 : vector<1x16xf32>
    %71 = math.exp %70 : vector<1x16xf32>
    %cst_51 = arith.constant 1.000000e+00 : f32
    %72 = vector.broadcast %cst_51 : f32 to vector<1x16xf32>
    %73 = arith.addf %72, %71 : vector<1x16xf32>
    %cst_52 = arith.constant 1.000000e+00 : f32
    %74 = vector.broadcast %cst_52 : f32 to vector<1x16xf32>
    %75 = arith.divf %74, %73 : vector<1x16xf32>
    %c0_53 = arith.constant 0 : index
    %c0_54 = arith.constant 0 : index
    %c0_55 = arith.constant 0 : index
    %76 = vector.load %arg18[%c0_53, %c0_54, %c0_55] : memref<1x1x16xf32, #tpu.memory_space<vmem>>, vector<1x1x16xf32>
    %77 = vector.shape_cast %76 : vector<1x1x16xf32> to vector<1x16xf32>
    %78 = vector.shape_cast %75 : vector<1x16xf32> to vector<1x1x16xf32>
    tpu.vector_store %arg18[%c0_53, %c0_54, %c0_55], %78 {strides = array<i32>} : memref<1x1x16xf32, #tpu.memory_space<vmem>>, vector<1x1x16xf32>,
    return
  }
  func.func @transform_0(%arg0: i32) -> (i32, i32) {
    %c0_i32 = arith.constant 0 : i32
    %c0_i32_0 = arith.constant 0 : i32
    return %arg0, %c0_i32 : i32, i32
  }
  func.func @transform_1(%arg0: i32) -> (i32, i32) {
    %c0_i32 = arith.constant 0 : i32
    %c0_i32_0 = arith.constant 0 : i32
    return %arg0, %c0_i32 : i32, i32
  }
  func.func @transform_2(%arg0: i32) -> (i32, i32) {
    %c0_i32 = arith.constant 0 : i32
    %c0_i32_0 = arith.constant 0 : i32
    return %arg0, %c0_i32 : i32, i32
  }
  func.func @transform_3(%arg0: i32) -> (i32, i32) {
    %c0_i32 = arith.constant 0 : i32
    %c0_i32_0 = arith.constant 0 : i32
    %c0_i32_1 = arith.constant 0 : i32
    return %c0_i32, %c0_i32_0 : i32, i32
  }
  func.func @transform_4(%arg0: i32) -> (i32, i32) {
    %c0_i32 = arith.constant 0 : i32
    %c0_i32_0 = arith.constant 0 : i32
    %c0_i32_1 = arith.constant 0 : i32
    return %c0_i32, %c0_i32_0 : i32, i32
  }
  func.func @transform_5(%arg0: i32) -> (i32, i32) {
    %c0_i32 = arith.constant 0 : i32
    %c0_i32_0 = arith.constant 0 : i32
    %c0_i32_1 = arith.constant 0 : i32
    return %c0_i32, %c0_i32_0 : i32, i32
  }
  func.func @transform_6(%arg0: i32) -> (i32, i32) {
    %c0_i32 = arith.constant 0 : i32
    %c0_i32_0 = arith.constant 0 : i32
    %c0_i32_1 = arith.constant 0 : i32
    return %c0_i32, %c0_i32_0 : i32, i32
  }
  func.func @transform_7(%arg0: i32) -> (i32, i32) {
    %c0_i32 = arith.constant 0 : i32
    %c0_i32_0 = arith.constant 0 : i32
    %c0_i32_1 = arith.constant 0 : i32
    return %c0_i32, %c0_i32_0 : i32, i32
  }
  func.func @transform_8(%arg0: i32) -> (i32, i32) {
    %c0_i32 = arith.constant 0 : i32
    %c0_i32_0 = arith.constant 0 : i32
    %c0_i32_1 = arith.constant 0 : i32
    return %c0_i32, %c0_i32_0 : i32, i32
  }
  func.func @transform_9(%arg0: i32) -> (i32, i32) {
    %c0_i32 = arith.constant 0 : i32
    %c0_i32_0 = arith.constant 0 : i32
    %c0_i32_1 = arith.constant 0 : i32
    return %c0_i32, %c0_i32_0 : i32, i32
  }
  func.func @transform_10(%arg0: i32) -> (i32, i32) {
    %c0_i32 = arith.constant 0 : i32
    %c0_i32_0 = arith.constant 0 : i32
    %c0_i32_1 = arith.constant 0 : i32
    return %c0_i32, %c0_i32_0 : i32, i32
  }
  func.func @transform_11(%arg0: i32) -> (i32, i32) {
    %c0_i32 = arith.constant 0 : i32
    %c0_i32_0 = arith.constant 0 : i32
    %c0_i32_1 = arith.constant 0 : i32
    return %c0_i32, %c0_i32_0 : i32, i32
  }
  func.func @transform_12(%arg0: i32) -> (i32, i32) {
    %c0_i32 = arith.constant 0 : i32
    %c0_i32_0 = arith.constant 0 : i32
    %c0_i32_1 = arith.constant 0 : i32
    return %c0_i32, %c0_i32_0 : i32, i32
  }
  func.func @transform_13(%arg0: i32) -> (i32, i32) {
    %c0_i32 = arith.constant 0 : i32
    %c0_i32_0 = arith.constant 0 : i32
    %c0_i32_1 = arith.constant 0 : i32
    return %c0_i32, %c0_i32_0 : i32, i32
  }
  func.func @transform_14(%arg0: i32) -> (i32, i32) {
    %c0_i32 = arith.constant 0 : i32
    %c0_i32_0 = arith.constant 0 : i32
    %c0_i32_1 = arith.constant 0 : i32
    return %c0_i32, %c0_i32_0 : i32, i32
  }
  func.func @transform_15(%arg0: i32) -> (i32, i32) {
    %c0_i32 = arith.constant 0 : i32
    %c0_i32_0 = arith.constant 0 : i32
    %c0_i32_1 = arith.constant 0 : i32
    return %c0_i32, %c0_i32_0 : i32, i32
  }
  func.func @transform_16(%arg0: i32) -> (i32, i32) {
    %c0_i32 = arith.constant 0 : i32
    %c0_i32_0 = arith.constant 0 : i32
    %c0_i32_1 = arith.constant 0 : i32
    return %c0_i32, %c0_i32_0 : i32, i32
  }
  func.func @transform_17(%arg0: i32) -> (i32, i32, i32) {
    %c0_i32 = arith.constant 0 : i32
    %c0_i32_0 = arith.constant 0 : i32
    %c0_i32_1 = arith.constant 0 : i32
    return %arg0, %c0_i32, %c0_i32_0 : i32, i32, i32
  }
}

</mosaic_0001>

<bundles_post_ra>
// kernel: tpu_custom_call.1
= control target key start
LH: loop header
LB: loop body
LE: loop exit
PB: predicated region body
PF: predicated region fallthrough
CT: control target
= control target key end

     0   :  { %s2620_s0 = inlined_call_operand.vmem [shape: bf16[16,32], index: 0, kind: input, shape index: {}]   ;;  %s2621_s1 = inlined_call_operand.vmem [shape: bf16[16,8], index: 1, kind: input, shape index: {}]   ;;  %s2622_s2 = inlined_call_operand.vmem [shape: bf16[16,8], index: 2, kind: input, shape index: {}]   ;;  %s2623_s3 = inlined_call_operand.vmem [shape: bf16[32,128], index: 3, kind: input, shape index: {}]   ;;  %s2624_s4 = inlined_call_operand.vmem [shape: bf16[8,128], index: 4, kind: input, shape index: {}]   ;;  %s2625_s5 = inlined_call_operand.vmem [shape: bf16[8,128], index: 5, kind: input, shape index: {}]   ;;  %s2626_s6 = inlined_call_operand.vmem [shape: f32[1,128], index: 6, kind: input, shape index: {}]   ;;  %s2627_s7 = inlined_call_operand.hbm [shape: bf16[128,256], index: 7, kind: input, shape index: {}]   ;;  %s2628_s8 = inlined_call_operand.vmem [shape: f32[1,256], index: 8, kind: input, shape index: {}]   ;;  %s2629_s9 = inlined_call_operand.hbm [shape: bf16[256,512], index: 9, kind: input, shape index: {}]   ;;  %s2630_s10 = inlined_call_operand.vmem [shape: f32[1,512], index: 10, kind: input, shape index: {}]   ;;  %s2631_s11 = inlined_call_operand.hbm [shape: bf16[512,256], index: 11, kind: input, shape index: {}]   ;;  %s2632_s12 = inlined_call_operand.vmem [shape: f32[1,256], index: 12, kind: input, shape index: {}]   ;;  %s2633_s13 = inlined_call_operand.hbm [shape: bf16[256,128], index: 13, kind: input, shape index: {}]   ;;  %s2634_s14 = inlined_call_operand.vmem [shape: f32[1,128], index: 14, kind: input, shape index: {}]   ;;  %s2635_s15 = inlined_call_operand.vmem [shape: bf16[1,128], index: 15, kind: input, shape index: {}]   ;;  %s2636_s16 = inlined_call_operand.<no memory space> [shape: f32[1,1], index: 16, kind: input, shape index: {}]   ;;  %s2637_s17 = inlined_call_operand.hbm [shape: f32[1,1,16], index: 17, kind: output, shape index: {}]  }
   0x1   :  { %2638 = sst [smem:[#allocation16_spill]] %s2620_s0  ;;  %v22_v0 = vstv %s2636_s16 }
   0x2   :  { %2639 = sst [smem:[#allocation17_spill]] %s2621_s1  ;;  %23 = vst [vmem:[#allocation2] sm:$0x1] %v22_v0 }
   0x3   :  { %24 = vsyncpa [#allocation4], 0 }
   0x4   :  { %25 = vsyncpa [#allocation7], 0 }
   0x5   :  { %26 = vsyncpa [#allocation10], 0 }
   0x6   :  { %27 = vsyncpa [#allocation5], 0  ;;  %s2362_s26 = smov [#allocation6]   ;;  %s2244_s0 = scalar_lea.hbm %s2629_s9, 8192 }
   0x7   :  { %s61_s27 = sshll.u32 %s2362_s26, 4  ;;  %p2245_p0 = scmp.ne.s32.totalorder %s2629_s9, %s2244_s0  ;;  %s62_s27 = int_to_ptr.vmem [resolvable:$true] %s61_s27 }
   0x8   :  { %p2248_p1 = scmp.lt.u32.totalorder %s2244_s0, %s2629_s9 }
   0xa   :  { %p2250_p2 = pnand %p2248_p1, %p2245_p0 }
   0xc   :  { %2253 = shalt.err (!%p2250_p2)
}
   0xd   :  { %s2254_s16 = scalar_lea.vmem %s62_s27, 8192  ;;  %p2259_p4 = scmp.lt.s32.totalorder %s62_s27, %s62_s27 }
   0xe   :  { %p2255_p3 = scmp.ne.s32.totalorder %s62_s27, %s2254_s16  ;;  %p2260_p5 = scmp.lt.s32.totalorder %s2254_s16, %s2254_s16 }
  0x10   :  { %p2261_p6 = por %p2260_p5, %p2259_p4 }
  0x12   :  { %p2262_p7 = pnand %p2261_p6, %p2255_p3 }
  0x14   :  { %2265 = shalt.err (!%p2262_p7)
}
  0x15   :  { %s2363_s20 = smov 256   ;;  %s2364_s21 = smov 16  }
  0x16   :  { %67 = dma.hbm_to_vmem [thread:$0]  %s2629_s9, 8192, %s62_s27, [#allocation7], %s2363_s20, %s2363_s20, %s2364_s21  }
  0x17   :  { %s2365_s24 = smov [#allocation3]   ;;  %s2266_s29 = scalar_lea.hbm %s2627_s7, 2048 }
  0x18   :  { %s47_s25 = sshll.u32 %s2365_s24, 4  ;;  %p2267_p8 = scmp.ne.s32.totalorder %s2627_s7, %s2266_s29  ;;  %s48_s25 = int_to_ptr.vmem [resolvable:$true] %s47_s25 }
  0x19   :  { %p2270_p9 = scmp.lt.u32.totalorder %s2266_s29, %s2627_s7 }
  0x1b   :  { %p2272_p10 = pnand %p2270_p9, %p2267_p8 }
  0x1d   :  { %2275 = shalt.err (!%p2272_p10)
}
  0x1e   :  { %s2276_s1 = scalar_lea.vmem %s48_s25, 2048  ;;  %p2281_p12 = scmp.lt.s32.totalorder %s48_s25, %s48_s25 }
  0x1f   :  { %p2277_p11 = scmp.ne.s32.totalorder %s48_s25, %s2276_s1  ;;  %p2282_p13 = scmp.lt.s32.totalorder %s2276_s1, %s2276_s1 }
  0x21   :  { %p2283_p0 = por %p2282_p13, %p2281_p12 }
  0x23   :  { %p2284_p1 = pnand %p2283_p0, %p2277_p11 }
  0x25   :  { %2287 = shalt.err (!%p2284_p1)
}
  0x26   :  { %s2366_s9 = smov 128   ;;  %s2367_s27 = smov 8  }
  0x27   :  { %53 = dma.hbm_to_vmem [thread:$0]  %s2627_s7, 2048, %s48_s25, [#allocation4], %s2366_s9, %s2366_s9, %s2367_s27  }
  0x28   :  { %s2368_s21 = smov [#allocation8]   ;;  %s2369_s23 = smov [#allocation9]  }
  0x29   :  { %s75_s22 = sshll.u32 %s2368_s21, 4  ;;  %s89_s24 = sshll.u32 %s2369_s23, 4  ;;  %s76_s22 = int_to_ptr.vmem [resolvable:$true] %s75_s22  ;;  %s2493_s24 = int_to_ptr.vmem [resolvable:$true] %s89_s24 }
  0x2a   :  { %s2288_s29 = scalar_lea.hbm %s2631_s11, 8192 }
  0x2b   :  { %p2289_p2 = scmp.ne.s32.totalorder %s2631_s11, %s2288_s29  ;;  %p2292_p3 = scmp.lt.u32.totalorder %s2288_s29, %s2631_s11 }
  0x2d   :  { %p2294_p4 = pnand %p2292_p3, %p2289_p2 }
  0x2f   :  { %2297 = shalt.err (!%p2294_p4)
}
  0x30   :  { %s2298_s7 = scalar_lea.vmem %s76_s22, 8192  ;;  %p2303_p6 = scmp.lt.s32.totalorder %s76_s22, %s76_s22 }
  0x31   :  { %p2299_p5 = scmp.ne.s32.totalorder %s76_s22, %s2298_s7  ;;  %p2304_p7 = scmp.lt.s32.totalorder %s2298_s7, %s2298_s7 }
  0x33   :  { %p2305_p8 = por %p2304_p7, %p2303_p6 }
  0x35   :  { %p2306_p9 = pnand %p2305_p8, %p2299_p5 }
  0x37   :  { %2309 = shalt.err (!%p2306_p9)
}
  0x38   :  { %81 = dma.hbm_to_vmem [thread:$0]  %s2631_s11, 8192, %s76_s22, [#allocation7], %s2366_s9, %s2366_s9, %s2367_s27  }
  0x39   :  { %s2310_s21 = scalar_lea.hbm %s2633_s13, 2048 }
  0x3a   :  { %p2311_p10 = scmp.ne.s32.totalorder %s2633_s13, %s2310_s21  ;;  %p2314_p11 = scmp.lt.u32.totalorder %s2310_s21, %s2633_s13 }
  0x3c   :  { %p2316_p12 = pnand %p2314_p11, %p2311_p10 }
  0x3e   :  { %2319 = shalt.err (!%p2316_p12)
}
  0x3f   :  { %s2320_s0 = scalar_lea.vmem %s2493_s24, 2048  ;;  %p2325_p0 = scmp.lt.s32.totalorder %s2493_s24, %s2493_s24 }
  0x40   :  { %p2321_p13 = scmp.ne.s32.totalorder %s2493_s24, %s2320_s0  ;;  %p2326_p1 = scmp.lt.s32.totalorder %s2320_s0, %s2320_s0 }
  0x42   :  { %p2327_p2 = por %p2326_p1, %p2325_p0 }
  0x44   :  { %p2328_p3 = pnand %p2327_p2, %p2321_p13 }
  0x46   :  { %2331 = shalt.err (!%p2328_p3)
}
  0x47   :  { %s2370_s11 = smov 64   ;;  %s2371_s9 = smov 4  }
  0x48   :  { %95 = dma.hbm_to_vmem [thread:$0]  %s2633_s13, 2048, %s2493_s24, [#allocation10], %s2370_s11, %s2370_s11, %s2371_s9  }
  0x49   :  { %2354 = dma.done.wait [#allocation4], 2048  }
  0x4a   :  { %2355 = vsyncadd [#allocation4], 4294965248 }
  0x4b   :  { %2356 = dma.done.wait [#allocation7], 16384  }
  0x4c   :  { %2357 = vsyncadd [#allocation7], 4294950912 }
  0x4d   :  { %2358 = dma.done.wait [#allocation10], 2048  }
  0x4e   :  { %2359 = vsyncadd [#allocation10], 4294965248  ;;  %v2372_v1 = vmov 0.0   ;;  %vm2373_vm0 = vmmov 0   ;;  %vm133_vm1 = vcmask 1043456   ;;  %s2640_s19 = sld [smem:[#allocation17_spill]] }
  0x4f   :  { %1954 = vmatprep.subr.bf16.mxu1 %v2372_v1  ;;  %1956 = vmatprep.mubr.msk.bf16.mxu1 %vm2373_vm0, %v2372_v1  ;;  %v123_v2 = vld [vmem:[%s2624_s4] sm:$0xf]  ;;  %vm129_vm2 = vcmask 64512   ;;  %v2005_v7 = vld [vmem:[%s2623_s3 + $0x8] sm:$0xff]   ;;  %s2641_s26 = sld [smem:[#allocation16_spill]]  ;;  %vm195_vm3 = vcmask 261120  }
  0x50   :  { %v135_v3 = vsel %vm133_vm1, %v123_v2, 0  ;;  %v2004_v5 = vld [vmem:[%s2623_s3] sm:$0xff]   ;;  %v2011_v14 = vld [vmem:[#allocation3 + $0x10] ss:$8 sps:$4 sm:$0xff]   ;;  %v2374_v27 = vmov 0  }
  0x51   :  { %1955 = vmatpush3.bf16.msra.mxu1 %v135_v3  ;;  %v242_v6 = vld [vmem:[%s2625_s5] sm:$0xf]  ;;  %v2010_v9 = vld [vmem:[#allocation3 + $0x4] ss:$8 sps:$4 sm:$0xff]   ;;  %v2017_v18 = vld [vmem:[#allocation3 + $0x30] ss:$8 sps:$4 sm:$0xff]   ;;  %2002 = vset.pattern.permute.xlu0 %v2374_v27 }
  0x52   :  { %1960 = vmatprep.subr.bf16.mxu1 %v2372_v1  ;;  %v252_v10 = vsel %vm133_vm1, %v242_v6, 0  ;;  %v2007_v11 = vld [vmem:[%s2622_s2] sm:$0xff]   ;;  %v2023_v22 = vld [vmem:[#allocation3 + $0x50] ss:$8 sps:$4 sm:$0xff]  }
  0x53   :  { %v2008_v12 = vld [vmem:[#allocation3] ss:$8 sps:$4 sm:$0xff]   ;;  %v2013_v13 = vld [vmem:[#allocation3 + $0x14] ss:$8 sps:$4 sm:$0xff]   ;;  %v2016_v15 = vld [vmem:[#allocation3 + $0x24] ss:$8 sps:$4 sm:$0xff]  }
  0x54   :  { %v2003_v4 = vld [vmem:[%s2640_s19] sm:$0xff]   ;;  %v2029_v26 = vld [vmem:[#allocation3 + $0x70] ss:$8 sps:$4 sm:$0xff]  }
  0x55   :  { %1957 = vmatmul.mubr.msk.bf16.vlgmr.msra.gmra.mrb[0].mxu1 %vm129_vm2, %v2003_v4  ;;  %v2006_v8 = vld [vmem:[%s2641_s26] sm:$0xff]  }
  0x56   :  { %1961 = vmatpush3.bf16.msra.mxu1 %v2004_v5  ;;  %1964 = vmatprep.mubr.msk.bf16.mxu1 %vm2373_vm0, %v2372_v1  ;;  %v2014_v16 = vld [vmem:[#allocation3 + $0x20] ss:$8 sps:$4 sm:$0xff]   ;;  %v2019_v17 = vld [vmem:[#allocation3 + $0x34] ss:$8 sps:$4 sm:$0xff]   ;;  %v2022_v19 = vld [vmem:[#allocation3 + $0x44] ss:$8 sps:$4 sm:$0xff]  }
  0x57   :  { %1962 = vmatprep.subr.bf16.mxu1 %v2372_v1  ;;  %v2020_v20 = vld [vmem:[#allocation3 + $0x40] ss:$8 sps:$4 sm:$0xff]   ;;  %v2025_v21 = vld [vmem:[#allocation3 + $0x54] ss:$8 sps:$4 sm:$0xff]   ;;  %v2028_v23 = vld [vmem:[#allocation3 + $0x64] ss:$8 sps:$4 sm:$0xff]  }
  0x58   :  { %v2026_v24 = vld [vmem:[#allocation3 + $0x60] ss:$8 sps:$4 sm:$0xff]   ;;  %v2031_v25 = vld [vmem:[#allocation3 + $0x74] ss:$8 sps:$4 sm:$0xff]  }
  0x59   :  { %v2032_v28 = vld [vmem:[#allocation6 + $0x4] ss:$16 sps:$4 sm:$0xff]   ;;  %v2036_v29 = vld [vmem:[#allocation6 + $0xc] ss:$16 sps:$4 sm:$0xff]   ;;  %v2037_v30 = vld [vmem:[#allocation6] ss:$16 sps:$4 sm:$0xff]  }
  0x5a   :  { %1963 = vmatpush3.bf16.msra.mxu1 %v2005_v7  ;;  %v2038_v31 = vld [vmem:[#allocation6 + $0x24] ss:$16 sps:$4 sm:$0xff]   ;;  %884 = vmatprep.subr.bf16.mxu0 %v2032_v28  ;;  %v2043_v32 = vld [vmem:[#allocation6 + $0x20] ss:$16 sps:$4 sm:$0xff]   ;;  %v1761_v3 = vld [vmem:[%s2626_s6] ss:$0 sm:$0xff] }
  0x5b   :  { %1968 = vmatprep.subr.bf16.mxu1 %v2372_v1  ;;  %885 = vmatpush1.bf16.msra.mxu0 %v2037_v30  ;;  %v2044_v33 = vld [vmem:[#allocation6 + $0x44] ss:$16 sps:$4 sm:$0xff]   ;;  %v2049_v34 = vld [vmem:[#allocation6 + $0x40] ss:$16 sps:$4 sm:$0xff]   ;;  %v2070_v28 = vld [vmem:[#allocation6 + $0xc8] ss:$16 sps:$4 sm:$0xff]  }
  0x5c   :  { %886 = vmatprep.subr.bf16.mxu0 %v2038_v31  ;;  %v2050_v35 = vld [vmem:[#allocation6 + $0x64] ss:$16 sps:$4 sm:$0xff]   ;;  %v2055_v36 = vld [vmem:[#allocation6 + $0x60] ss:$16 sps:$4 sm:$0xff]   ;;  %v2076_v30 = vld [vmem:[#allocation6 + $0xe8] ss:$16 sps:$4 sm:$0xff]  }
  0x5d   :  { %1965 = vmatmul.mubr.msk.bf16.vlgmr.msra.gmra.mrb[4].mxu1 %vm195_vm3, %v2006_v8  ;;  %v2056_v37 = vld [vmem:[#allocation6 + $0x84] ss:$16 sps:$4 sm:$0xff]   ;;  %v2061_v38 = vld [vmem:[#allocation6 + $0x80] ss:$16 sps:$4 sm:$0xff]   ;;  %v2084_v31 = vld [vmem:[#allocation6 + $0x10c] ss:$16 sps:$4 sm:$0xff]  }
  0x5e   :  { %1969 = vmatpush3.bf16.msra.mxu1 %v252_v10  ;;  %1970 = vmatprep.mubr.msk.bf16.mxu1 %vm2373_vm0, %v2372_v1  ;;  %v2062_v39 = vld [vmem:[#allocation6 + $0xa4] ss:$16 sps:$4 sm:$0xff]   ;;  %v2067_v40 = vld [vmem:[#allocation6 + $0xa0] ss:$16 sps:$4 sm:$0xff]  }
  0x5f   :  { %421 = vmatprep.subr.bf16.mxu1 %v2010_v9  ;;  %887 = vmatpush1.bf16.msra.mxu0 %v2043_v32  ;;  %v2068_v41 = vld [vmem:[#allocation6 + $0xc4] ss:$16 sps:$4 sm:$0xff]   ;;  %v2073_v42 = vld [vmem:[#allocation6 + $0xc0] ss:$16 sps:$4 sm:$0xff]   ;;  %v2082_v32 = vld [vmem:[#allocation6 + $0x108] ss:$16 sps:$4 sm:$0xff]  }
  0x60   :  { %888 = vmatprep.subr.bf16.mxu0 %v2044_v33  ;;  %v2074_v43 = vld [vmem:[#allocation6 + $0xe4] ss:$16 sps:$4 sm:$0xff]   ;;  %v2079_v44 = vld [vmem:[#allocation6 + $0xe0] ss:$16 sps:$4 sm:$0xff]   ;;  %v2090_v33 = vld [vmem:[#allocation6 + $0x12c] ss:$16 sps:$4 sm:$0xff]  }
  0x61   :  { %v2080_v45 = vld [vmem:[#allocation6 + $0x104] ss:$16 sps:$4 sm:$0xff]   ;;  %v2085_v46 = vld [vmem:[#allocation6 + $0x100] ss:$16 sps:$4 sm:$0xff]  }
  0x62   :  { %v2086_v47 = vld [vmem:[#allocation6 + $0x124] ss:$16 sps:$4 sm:$0xff]   ;;  %v2091_v48 = vld [vmem:[#allocation6 + $0x120] ss:$16 sps:$4 sm:$0xff]  }
  0x63   :  { %889 = vmatpush1.bf16.msra.mxu0 %v2049_v34  ;;  %v2092_v49 = vld [vmem:[#allocation6 + $0x144] ss:$16 sps:$4 sm:$0xff]   ;;  %v2097_v50 = vld [vmem:[#allocation6 + $0x140] ss:$16 sps:$4 sm:$0xff]   ;;  %v2088_v34 = vld [vmem:[#allocation6 + $0x128] ss:$16 sps:$4 sm:$0xff]  }
  0x64   :  { %890 = vmatprep.subr.bf16.mxu0 %v2050_v35  ;;  %v2098_v51 = vld [vmem:[#allocation6 + $0x164] ss:$16 sps:$4 sm:$0xff]   ;;  %v2103_v52 = vld [vmem:[#allocation6 + $0x160] ss:$16 sps:$4 sm:$0xff]   ;;  %v2096_v35 = vld [vmem:[#allocation6 + $0x14c] ss:$16 sps:$4 sm:$0xff]  }
  0x65   :  { %1971 = vmatmul.mubr.msk.bf16.vlgmr.msra.gmra.mrb[8].mxu1 %vm129_vm2, %v2007_v11  ;;  %v2104_v53 = vld [vmem:[#allocation6 + $0x184] ss:$16 sps:$4 sm:$0xff]   ;;  %v2109_v54 = vld [vmem:[#allocation6 + $0x180] ss:$16 sps:$4 sm:$0xff]  }
  0x66   :  { %422 = vmatpush1.bf16.msra.mxu1 %v2008_v12  ;;  %453 = vmatprep.mubr.bf16.mxu1 %v2374_v27  ;;  %v2072_v27 = vld [vmem:[#allocation6 + $0xcc] ss:$16 sps:$4 sm:$0xff]  }
  0x67   :  { %423 = vmatprep.subr.bf16.mxu1 %v2013_v13  ;;  %891 = vmatpush1.bf16.msra.mxu0 %v2055_v36  ;;  %v2094_v36 = vld [vmem:[#allocation6 + $0x148] ss:$16 sps:$4 sm:$0xff]  }
  0x68   :  { %892 = vmatprep.subr.bf16.mxu0 %v2056_v37  ;;  %v2102_v37 = vld [vmem:[#allocation6 + $0x16c] ss:$16 sps:$4 sm:$0xff]  }
  0x6a   :  { %424 = vmatpush1.bf16.msra.mxu1 %v2011_v14 }
  0x6b   :  { %425 = vmatprep.subr.bf16.mxu1 %v2016_v15  ;;  %893 = vmatpush1.bf16.msra.mxu0 %v2061_v38  ;;  %v2034_v15 = vld [vmem:[#allocation6 + $0x8] ss:$16 sps:$4 sm:$0xff]  }
  0x6c   :  { %894 = vmatprep.subr.bf16.mxu0 %v2062_v39  ;;  %v2100_v38 = vld [vmem:[#allocation6 + $0x168] ss:$16 sps:$4 sm:$0xff]   ;;  %v2108_v39 = vld [vmem:[#allocation6 + $0x18c] ss:$16 sps:$4 sm:$0xff]  }
  0x6e   :  { %426 = vmatpush1.bf16.msra.mxu1 %v2014_v16 }
  0x6f   :  { %427 = vmatprep.subr.bf16.mxu1 %v2019_v17  ;;  %895 = vmatpush1.bf16.msra.mxu0 %v2067_v40  ;;  %v2042_v17 = vld [vmem:[#allocation6 + $0x2c] ss:$16 sps:$4 sm:$0xff]   ;;  %v2106_v40 = vld [vmem:[#allocation6 + $0x188] ss:$16 sps:$4 sm:$0xff]  }
  0x70   :  { %896 = vmatprep.subr.bf16.mxu0 %v2068_v41  ;;  %v2110_v41 = vld [vmem:[#allocation6 + $0x1a4] ss:$16 sps:$4 sm:$0xff]  }
  0x72   :  { %428 = vmatpush1.bf16.msra.mxu1 %v2017_v18  ;;  %v2040_v18 = vld [vmem:[#allocation6 + $0x28] ss:$16 sps:$4 sm:$0xff]  }
  0x73   :  { %429 = vmatprep.subr.bf16.mxu1 %v2022_v19  ;;  %897 = vmatpush1.bf16.msra.mxu0 %v2073_v42  ;;  %v2048_v19 = vld [vmem:[#allocation6 + $0x4c] ss:$16 sps:$4 sm:$0xff]  }
  0x74   :  { %898 = vmatprep.subr.bf16.mxu0 %v2074_v43  ;;  %v2114_v42 = vld [vmem:[#allocation6 + $0x1ac] ss:$16 sps:$4 sm:$0xff]   ;;  %v2112_v43 = vld [vmem:[#allocation6 + $0x1a8] ss:$16 sps:$4 sm:$0xff]  }
  0x76   :  { %430 = vmatpush1.bf16.msra.mxu1 %v2020_v20  ;;  %v2046_v20 = vld [vmem:[#allocation6 + $0x48] ss:$16 sps:$4 sm:$0xff]  }
  0x77   :  { %431 = vmatprep.subr.bf16.mxu1 %v2025_v21  ;;  %899 = vmatpush1.bf16.msra.mxu0 %v2079_v44  ;;  %v2054_v21 = vld [vmem:[#allocation6 + $0x6c] ss:$16 sps:$4 sm:$0xff]   ;;  %v2115_v44 = vld [vmem:[#allocation6 + $0x1a0] ss:$16 sps:$4 sm:$0xff]  }
  0x78   :  { %900 = vmatprep.subr.bf16.mxu0 %v2080_v45  ;;  %v2116_v45 = vld [vmem:[#allocation6 + $0x1c4] ss:$16 sps:$4 sm:$0xff]  }
  0x7a   :  { %432 = vmatpush1.bf16.msra.mxu1 %v2023_v22  ;;  %v2052_v22 = vld [vmem:[#allocation6 + $0x68] ss:$16 sps:$4 sm:$0xff]  }
  0x7b   :  { %433 = vmatprep.subr.bf16.mxu1 %v2028_v23  ;;  %901 = vmatpush1.bf16.msra.mxu0 %v2085_v46  ;;  %v2060_v23 = vld [vmem:[#allocation6 + $0x8c] ss:$16 sps:$4 sm:$0xff]  }
  0x7c   :  { %902 = vmatprep.subr.bf16.mxu0 %v2086_v47  ;;  %v2120_v46 = vld [vmem:[#allocation6 + $0x1cc] ss:$16 sps:$4 sm:$0xff]   ;;  %v2118_v47 = vld [vmem:[#allocation6 + $0x1c8] ss:$16 sps:$4 sm:$0xff]  }
  0x7e   :  { %434 = vmatpush1.bf16.msra.mxu1 %v2026_v24  ;;  %v2058_v24 = vld [vmem:[#allocation6 + $0x88] ss:$16 sps:$4 sm:$0xff]  }
  0x7f   :  { %435 = vmatprep.subr.bf16.mxu1 %v2031_v25  ;;  %903 = vmatpush1.bf16.msra.mxu0 %v2091_v48  ;;  %v2066_v25 = vld [vmem:[#allocation6 + $0xac] ss:$16 sps:$4 sm:$0xff]   ;;  %v2121_v48 = vld [vmem:[#allocation6 + $0x1c0] ss:$16 sps:$4 sm:$0xff]  }
  0x80   :  { %904 = vmatprep.subr.bf16.mxu0 %v2092_v49  ;;  %v2122_v49 = vld [vmem:[#allocation6 + $0x1e4] ss:$16 sps:$4 sm:$0xff]  }
  0x82   :  { %436 = vmatpush1.bf16.msra.mxu1 %v2029_v26  ;;  %v2064_v26 = vld [vmem:[#allocation6 + $0xa8] ss:$16 sps:$4 sm:$0xff]  }
  0x83   :  { %927 = vmatprep.subr.bf16.mxu1 %v2036_v29  ;;  %905 = vmatpush1.bf16.msra.mxu0 %v2097_v50  ;;  %v2078_v29 = vld [vmem:[#allocation6 + $0xec] ss:$16 sps:$4 sm:$0xff]   ;;  %v2124_v50 = vld [vmem:[#allocation6 + $0x1e8] ss:$16 sps:$4 sm:$0xff]  }
  0x84   :  { %906 = vmatprep.subr.bf16.mxu0 %v2098_v51  ;;  %v2126_v51 = vld [vmem:[#allocation6 + $0x1ec] ss:$16 sps:$4 sm:$0xff]  }
  0x87   :  { %907 = vmatpush1.bf16.msra.mxu0 %v2103_v52  ;;  %v2127_v52 = vld [vmem:[#allocation6 + $0x1e0] ss:$16 sps:$4 sm:$0xff]  }
  0x88   :  { %908 = vmatprep.subr.bf16.mxu0 %v2104_v53  ;;  %v2130_v53 = vld [vmem:[#allocation8 + $0x4] ss:$8 sps:$4 sm:$0xff]  }
  0x8b   :  { %909 = vmatpush1.bf16.msra.mxu0 %v2109_v54  ;;  %v331_v54 = vlaneseq }
  0x8c   :  { %910 = vmatprep.subr.bf16.mxu0 %v2110_v41  ;;  %v2169_v41 = vld [vmem:[#allocation8 + $0xd4] ss:$8 sps:$4 sm:$0xff]  }
  0x8f   :  { %911 = vmatpush1.bf16.msra.mxu0 %v2115_v44  ;;  %v2170_v44 = vld [vmem:[#allocation8 + $0xe0] ss:$8 sps:$4 sm:$0xff]  }
  0x90   :  { %912 = vmatprep.subr.bf16.mxu0 %v2116_v45  ;;  %v2175_v45 = vld [vmem:[#allocation8 + $0xf4] ss:$8 sps:$4 sm:$0xff]  }
  0x93   :  { %913 = vmatpush1.bf16.msra.mxu0 %v2121_v48  ;;  %v2224_v48 = vld [vmem:[#allocation9 + $0x40] sm:$0xff]  }
  0x94   :  { %914 = vmatprep.subr.bf16.mxu0 %v2122_v49  ;;  %v2225_v49 = vld [vmem:[#allocation9] sm:$0xff]  }
  0x97   :  { %915 = vmatpush1.bf16.msra.mxu0 %v2127_v52  ;;  %v2228_v52 = vld [vmem:[#allocation9 + $0x50] sm:$0xff]  }
  0x98   :  { %1394 = vmatprep.subr.bf16.mxu0 %v2130_v53  ;;  %v2229_v53 = vld [vmem:[#allocation9 + $0x10] sm:$0xff]  }
 0x128   :  { %v171_v55 = vpop.f32.mrb[0].mxu1 }
 0x129   :  { %v1958_v56 = vpop.f32.mrb[1].mxu1 }
 0x12a   :  { %v174_v57 = vpop.f32.mrb[2].mxu1 }
 0x12b   :  { %v1959_v58 = vpop.f32.mrb[3].mxu1 }
 0x130   :  { %v233_v59 = vpop.f32.mrb[4].mxu1 }
 0x131   :  { %v234_v60 = vadd.f32 %v233_v59, %v171_v55  ;;  %v1966_v61 = vpop.f32.mrb[5].mxu1  ;;  %v2562_v55 = vshrl.u32 %v331_v54, 7  ;;  %v2230_v54 = vld [vmem:[#allocation9 + $0x58] sm:$0xff]  }
 0x132   :  { %v236_v62 = vpop.f32.mrb[6].mxu1 }
 0x133   :  { %v237_v63 = vadd.f32 %v236_v62, %v174_v57  ;;  %v1967_v0 = vpop.f32.mrb[7].mxu1  ;;  %v2565_v56 = vsub.s32 0, %v2562_v55  ;;  %v329_v57 = vld [vmem:[%s2628_s8] sm:$0x3]  ;;  %v2571_v58 = vsub.s32 1, %v2562_v55 }
 0x135   :  { %v334_v59 = vrot.slane %v329_v57, %v2565_v56 }
 0x138   :  { %v288_v2 = vpop.f32.mrb[8].mxu1 }
 0x139   :  { %v295_v4 = vadd.f32 %v288_v2, %v234_v60  ;;  %v1972_v5 = vpop.f32.mrb[9].mxu1  ;;  %v338_v60 = vrot.slane %v329_v57, %v2571_v58  ;;  %v2231_v57 = vld [vmem:[#allocation9 + $0x18] sm:$0xff]  }
 0x13a   :  { %v291_v6 = vpop.f32.mrb[10].mxu1 }
 0x13b   :  { %v304_v7 = vadd.f32 %v1761_v3, %v295_v4  ;;  %v296_v8 = vadd.f32 %v291_v6, %v237_v63  ;;  %v1973_v9 = vpop.f32.mrb[11].mxu1 }
 0x13d   :  { %v308_v10 = vmul.f32 0.2, %v304_v7  ;;  %v305_v11 = vadd.f32 %v1761_v3, %v296_v8  ;;  %vm306_vm4 = vcmp.gt.f32.partialorder %v304_v7, 0.0 }
 0x13f   :  { %vm307_vm5 = vcmp.gt.f32.partialorder %v305_v11, 0.0  ;;  %v309_v12 = vmul.f32 0.2, %v305_v11  ;;  %v310_v13 = vsel %vm306_vm4, %v304_v7, %v308_v10 }
 0x141   :  { %v311_v14 = vsel %vm307_vm5, %v305_v11, %v309_v12 }
 0x142   :  { %v312_v16 = vpack.c.bf16 %v311_v14, %v310_v13 }
 0x144   :  { %454 = vmatmul.mubr.bf16.vlgmr.msra.gmra.mrb[12].mxu1 %v312_v16  ;;  %v2128_v16 = vld [vmem:[#allocation8] ss:$8 sps:$4 sm:$0xff]  }
 0x145   :  { %928 = vmatpush1.bf16.msra.mxu1 %v2034_v15 }
 0x146   :  { %929 = vmatprep.subr.bf16.mxu1 %v2042_v17  ;;  %v2133_v17 = vld [vmem:[#allocation8 + $0x14] ss:$8 sps:$4 sm:$0xff]  }
 0x149   :  { %930 = vmatpush1.bf16.msra.mxu1 %v2040_v18  ;;  %v2131_v18 = vld [vmem:[#allocation8 + $0x10] ss:$8 sps:$4 sm:$0xff]  }
 0x14a   :  { %931 = vmatprep.subr.bf16.mxu1 %v2048_v19  ;;  %v2136_v19 = vld [vmem:[#allocation8 + $0x24] ss:$8 sps:$4 sm:$0xff]  }
 0x14d   :  { %932 = vmatpush1.bf16.msra.mxu1 %v2046_v20  ;;  %v2134_v20 = vld [vmem:[#allocation8 + $0x20] ss:$8 sps:$4 sm:$0xff]  }
 0x14e   :  { %933 = vmatprep.subr.bf16.mxu1 %v2054_v21  ;;  %v2139_v21 = vld [vmem:[#allocation8 + $0x34] ss:$8 sps:$4 sm:$0xff]  }
 0x151   :  { %934 = vmatpush1.bf16.msra.mxu1 %v2052_v22  ;;  %v2137_v22 = vld [vmem:[#allocation8 + $0x30] ss:$8 sps:$4 sm:$0xff]  }
 0x152   :  { %935 = vmatprep.subr.bf16.mxu1 %v2060_v23  ;;  %v2142_v23 = vld [vmem:[#allocation8 + $0x44] ss:$8 sps:$4 sm:$0xff]  }
 0x155   :  { %936 = vmatpush1.bf16.msra.mxu1 %v2058_v24  ;;  %v2140_v24 = vld [vmem:[#allocation8 + $0x40] ss:$8 sps:$4 sm:$0xff]  }
 0x156   :  { %937 = vmatprep.subr.bf16.mxu1 %v2066_v25  ;;  %v2145_v25 = vld [vmem:[#allocation8 + $0x54] ss:$8 sps:$4 sm:$0xff]  }
 0x159   :  { %938 = vmatpush1.bf16.msra.mxu1 %v2064_v26  ;;  %v2143_v26 = vld [vmem:[#allocation8 + $0x50] ss:$8 sps:$4 sm:$0xff]  }
 0x15a   :  { %939 = vmatprep.subr.bf16.mxu1 %v2072_v27  ;;  %v2148_v27 = vld [vmem:[#allocation8 + $0x64] ss:$8 sps:$4 sm:$0xff]  }
 0x15d   :  { %940 = vmatpush1.bf16.msra.mxu1 %v2070_v28  ;;  %v2146_v28 = vld [vmem:[#allocation8 + $0x60] ss:$8 sps:$4 sm:$0xff]  }
 0x15e   :  { %941 = vmatprep.subr.bf16.mxu1 %v2078_v29  ;;  %v2151_v29 = vld [vmem:[#allocation8 + $0x74] ss:$8 sps:$4 sm:$0xff]  }
 0x161   :  { %942 = vmatpush1.bf16.msra.mxu1 %v2076_v30  ;;  %v2149_v30 = vld [vmem:[#allocation8 + $0x70] ss:$8 sps:$4 sm:$0xff]  }
 0x162   :  { %943 = vmatprep.subr.bf16.mxu1 %v2084_v31  ;;  %v2154_v31 = vld [vmem:[#allocation8 + $0x84] ss:$8 sps:$4 sm:$0xff]  }
 0x165   :  { %944 = vmatpush1.bf16.msra.mxu1 %v2082_v32  ;;  %v2152_v32 = vld [vmem:[#allocation8 + $0x80] ss:$8 sps:$4 sm:$0xff]  }
 0x166   :  { %945 = vmatprep.subr.bf16.mxu1 %v2090_v33  ;;  %v2157_v33 = vld [vmem:[#allocation8 + $0x94] ss:$8 sps:$4 sm:$0xff]  }
 0x169   :  { %946 = vmatpush1.bf16.msra.mxu1 %v2088_v34  ;;  %v2155_v34 = vld [vmem:[#allocation8 + $0x90] ss:$8 sps:$4 sm:$0xff]  }
 0x16a   :  { %947 = vmatprep.subr.bf16.mxu1 %v2096_v35  ;;  %v2160_v35 = vld [vmem:[#allocation8 + $0xa4] ss:$8 sps:$4 sm:$0xff]  }
 0x16d   :  { %948 = vmatpush1.bf16.msra.mxu1 %v2094_v36  ;;  %v2158_v36 = vld [vmem:[#allocation8 + $0xa0] ss:$8 sps:$4 sm:$0xff]  }
 0x16e   :  { %949 = vmatprep.subr.bf16.mxu1 %v2102_v37  ;;  %v2163_v37 = vld [vmem:[#allocation8 + $0xb4] ss:$8 sps:$4 sm:$0xff]  }
 0x171   :  { %950 = vmatpush1.bf16.msra.mxu1 %v2100_v38  ;;  %v2161_v38 = vld [vmem:[#allocation8 + $0xb0] ss:$8 sps:$4 sm:$0xff]  }
 0x172   :  { %951 = vmatprep.subr.bf16.mxu1 %v2108_v39  ;;  %v2166_v39 = vld [vmem:[#allocation8 + $0xc4] ss:$8 sps:$4 sm:$0xff]  }
 0x175   :  { %952 = vmatpush1.bf16.msra.mxu1 %v2106_v40  ;;  %v2164_v40 = vld [vmem:[#allocation8 + $0xc0] ss:$8 sps:$4 sm:$0xff]  }
 0x176   :  { %953 = vmatprep.subr.bf16.mxu1 %v2114_v42  ;;  %v2167_v42 = vld [vmem:[#allocation8 + $0xd0] ss:$8 sps:$4 sm:$0xff]  }
 0x179   :  { %954 = vmatpush1.bf16.msra.mxu1 %v2112_v43  ;;  %v2172_v43 = vld [vmem:[#allocation8 + $0xe4] ss:$8 sps:$4 sm:$0xff]  }
 0x17a   :  { %955 = vmatprep.subr.bf16.mxu1 %v2120_v46  ;;  %v2173_v46 = vld [vmem:[#allocation8 + $0xf0] ss:$8 sps:$4 sm:$0xff]  }
 0x17d   :  { %956 = vmatpush1.bf16.msra.mxu1 %v2118_v47  ;;  %v2178_v47 = vld [vmem:[#allocation8 + $0x104] ss:$8 sps:$4 sm:$0xff]  }
 0x17e   :  { %957 = vmatprep.subr.bf16.mxu1 %v2126_v51  ;;  %v2227_v51 = vld [vmem:[#allocation9 + $0x8] sm:$0xff]  }
 0x181   :  { %958 = vmatpush1.bf16.msra.mxu1 %v2124_v50  ;;  %v2226_v50 = vld [vmem:[#allocation9 + $0x48] sm:$0xff]  }
 0x182   :  { %1930 = vmatprep.subr.bf16.mxu1 %v2224_v48  ;;  %v2188_v48 = vld [vmem:[#allocation8 + $0x140] ss:$8 sps:$4 sm:$0xff]  }
 0x217   :  { %v455_v61 = vpop.f32.mrb[12].mxu1 }
 0x218   :  { %v456_v62 = vadd.f32 %v455_v61, %v334_v59  ;;  %v457_v63 = vpop.f32.mrb[13].mxu1  ;;  %v554_v61 = vsub.s32 2, %v2562_v55 }
 0x219   :  { %v458_v0 = vadd.f32 %v457_v63, %v338_v60  ;;  %v459_v2 = vpop.f32.mrb[14].mxu1  ;;  %v558_v63 = vsub.s32 3, %v2562_v55 }
 0x21a   :  { %v468_v3 = vmul.f32 0.2, %v456_v62  ;;  %v460_v4 = vadd.f32 %v459_v2, %v334_v59  ;;  %v461_v5 = vpop.f32.mrb[15].mxu1  ;;  %vm464_vm6 = vcmp.gt.f32.partialorder %v456_v62, 0.0  ;;  %v2232_v59 = vld [vmem:[#allocation9 + $0x60] sm:$0xff]  }
 0x21b   :  { %v469_v6 = vmul.f32 0.2, %v458_v0  ;;  %v462_v7 = vadd.f32 %v461_v5, %v338_v60  ;;  %vm465_vm8 = vcmp.gt.f32.partialorder %v458_v0, 0.0  ;;  %v2233_v60 = vld [vmem:[#allocation9 + $0x20] sm:$0xff]  }
 0x21c   :  { %vm466_vm7 = vcmp.gt.f32.partialorder %v460_v4, 0.0  ;;  %v470_v8 = vmul.f32 0.2, %v460_v4  ;;  %v472_v10 = vsel %vm464_vm6, %v456_v62, %v468_v3  ;;  %v542_v62 = vld [vmem:[%s2630_s10] sm:$0xf] }
 0x21d   :  { %v471_v9 = vmul.f32 0.2, %v462_v7  ;;  %vm467_vm9 = vcmp.gt.f32.partialorder %v462_v7, 0.0  ;;  %v473_v12 = vsel %vm465_vm8, %v458_v0, %v469_v6  ;;  %v547_v0 = vrot.slane %v542_v62, %v2565_v56 }
 0x21e   :  { %v474_v11 = vsel %vm466_vm7, %v460_v4, %v470_v8  ;;  %v555_v2 = vrot.slane %v542_v62, %v554_v61  ;;  %v551_v3 = vrot.slane %v542_v62, %v2571_v58  ;;  %v559_v4 = vrot.slane %v542_v62, %v558_v63  ;;  %v2203_v61 = vld [vmem:[#allocation8 + $0x190] ss:$8 sps:$4 sm:$0xff]   ;;  %v2208_v62 = vld [vmem:[#allocation8 + $0x1a4] ss:$8 sps:$4 sm:$0xff]   ;;  %v2206_v63 = vld [vmem:[#allocation8 + $0x1a0] ss:$8 sps:$4 sm:$0xff]  }
 0x21f   :  { %v475_v13 = vsel %vm467_vm9, %v462_v7, %v471_v9  ;;  %v476_v14 = vpack.c.bf16 %v474_v11, %v472_v10 }
 0x220   :  { %v477_v15 = vpack.c.bf16 %v475_v13, %v473_v12 }
 0x222   :  { %916 = vmatprep.mubr.bf16.mxu0 %v477_v15  ;;  %959 = vmatprep.mubr.bf16.mxu1 %v477_v15 }
 0x223   :  { %917 = vmatmul.mubr.bf16.vlgmr.msra.gmra.mrb[0].mxu0 %v476_v14  ;;  %960 = vmatmul.mubr.bf16.vlgmr.msra.gmra.mrb[16].mxu1 %v476_v14 }
 0x224   :  { %1395 = vmatpush1.bf16.msra.mxu0 %v2128_v16  ;;  %1931 = vmatpush3.bf16.msra.mxu1 %v2225_v49  ;;  %v2193_v49 = vld [vmem:[#allocation8 + $0x154] ss:$8 sps:$4 sm:$0xff]  }
 0x225   :  { %1396 = vmatprep.subr.bf16.mxu0 %v2133_v17  ;;  %1932 = vmatprep.subr.bf16.mxu1 %v2226_v50  ;;  %v2191_v50 = vld [vmem:[#allocation8 + $0x150] ss:$8 sps:$4 sm:$0xff]  }
 0x228   :  { %1397 = vmatpush1.bf16.msra.mxu0 %v2131_v18  ;;  %1933 = vmatpush3.bf16.msra.mxu1 %v2227_v51  ;;  %v2196_v51 = vld [vmem:[#allocation8 + $0x164] ss:$8 sps:$4 sm:$0xff]  }
 0x229   :  { %1398 = vmatprep.subr.bf16.mxu0 %v2136_v19  ;;  %1934 = vmatprep.subr.bf16.mxu1 %v2228_v52  ;;  %v2194_v52 = vld [vmem:[#allocation8 + $0x160] ss:$8 sps:$4 sm:$0xff]  }
 0x22c   :  { %1399 = vmatpush1.bf16.msra.mxu0 %v2134_v20  ;;  %1935 = vmatpush3.bf16.msra.mxu1 %v2229_v53  ;;  %v2199_v53 = vld [vmem:[#allocation8 + $0x174] ss:$8 sps:$4 sm:$0xff]  }
 0x22d   :  { %1400 = vmatprep.subr.bf16.mxu0 %v2139_v21  ;;  %1936 = vmatprep.subr.bf16.mxu1 %v2230_v54  ;;  %v2197_v54 = vld [vmem:[#allocation8 + $0x170] ss:$8 sps:$4 sm:$0xff]  }
 0x230   :  { %1401 = vmatpush1.bf16.msra.mxu0 %v2137_v22  ;;  %1937 = vmatpush3.bf16.msra.mxu1 %v2231_v57  ;;  %v2202_v57 = vld [vmem:[#allocation8 + $0x184] ss:$8 sps:$4 sm:$0xff]  }
 0x231   :  { %1402 = vmatprep.subr.bf16.mxu0 %v2142_v23  ;;  %1938 = vmatprep.subr.bf16.mxu1 %v2232_v59  ;;  %v2200_v59 = vld [vmem:[#allocation8 + $0x180] ss:$8 sps:$4 sm:$0xff]  }
 0x234   :  { %1403 = vmatpush1.bf16.msra.mxu0 %v2140_v24  ;;  %1939 = vmatpush3.bf16.msra.mxu1 %v2233_v60  ;;  %v2205_v60 = vld [vmem:[#allocation8 + $0x194] ss:$8 sps:$4 sm:$0xff]  }
 0x235   :  { %1404 = vmatprep.subr.bf16.mxu0 %v2145_v25 }
 0x238   :  { %1405 = vmatpush1.bf16.msra.mxu0 %v2143_v26 }
 0x239   :  { %1406 = vmatprep.subr.bf16.mxu0 %v2148_v27 }
 0x23c   :  { %1407 = vmatpush1.bf16.msra.mxu0 %v2146_v28 }
 0x23d   :  { %1408 = vmatprep.subr.bf16.mxu0 %v2151_v29 }
 0x240   :  { %1409 = vmatpush1.bf16.msra.mxu0 %v2149_v30 }
 0x241   :  { %1410 = vmatprep.subr.bf16.mxu0 %v2154_v31 }
 0x244   :  { %1411 = vmatpush1.bf16.msra.mxu0 %v2152_v32 }
 0x245   :  { %1412 = vmatprep.subr.bf16.mxu0 %v2157_v33 }
 0x248   :  { %1413 = vmatpush1.bf16.msra.mxu0 %v2155_v34 }
 0x249   :  { %1414 = vmatprep.subr.bf16.mxu0 %v2160_v35 }
 0x24c   :  { %1415 = vmatpush1.bf16.msra.mxu0 %v2158_v36 }
 0x24d   :  { %1416 = vmatprep.subr.bf16.mxu0 %v2163_v37 }
 0x250   :  { %1417 = vmatpush1.bf16.msra.mxu0 %v2161_v38 }
 0x251   :  { %1418 = vmatprep.subr.bf16.mxu0 %v2166_v39  ;;  %v2176_v39 = vld [vmem:[#allocation8 + $0x100] ss:$8 sps:$4 sm:$0xff]  }
 0x254   :  { %1419 = vmatpush1.bf16.msra.mxu0 %v2164_v40 }
 0x255   :  { %1420 = vmatprep.subr.bf16.mxu0 %v2169_v41  ;;  %v2181_v41 = vld [vmem:[#allocation8 + $0x114] ss:$8 sps:$4 sm:$0xff]  }
 0x258   :  { %1421 = vmatpush1.bf16.msra.mxu0 %v2167_v42  ;;  %v2179_v42 = vld [vmem:[#allocation8 + $0x110] ss:$8 sps:$4 sm:$0xff]  }
 0x259   :  { %1422 = vmatprep.subr.bf16.mxu0 %v2172_v43  ;;  %v2184_v43 = vld [vmem:[#allocation8 + $0x124] ss:$8 sps:$4 sm:$0xff]  }
 0x25c   :  { %1423 = vmatpush1.bf16.msra.mxu0 %v2170_v44  ;;  %v2182_v44 = vld [vmem:[#allocation8 + $0x120] ss:$8 sps:$4 sm:$0xff]  }
 0x25d   :  { %1424 = vmatprep.subr.bf16.mxu0 %v2175_v45  ;;  %v2187_v45 = vld [vmem:[#allocation8 + $0x134] ss:$8 sps:$4 sm:$0xff]  }
 0x260   :  { %1425 = vmatpush1.bf16.msra.mxu0 %v2173_v46  ;;  %v2185_v46 = vld [vmem:[#allocation8 + $0x130] ss:$8 sps:$4 sm:$0xff]  }
 0x261   :  { %1437 = vmatprep.subr.bf16.mxu0 %v2178_v47  ;;  %v2190_v47 = vld [vmem:[#allocation8 + $0x144] ss:$8 sps:$4 sm:$0xff]  }
 0x2f6   :  { %v918_v5 = vpop.f32.mrb[0].mxu0  ;;  %v961_v6 = vpop.f32.mrb[16].mxu1 }
 0x2f7   :  { %v919_v7 = vadd.f32 %v918_v5, %v547_v0  ;;  %v962_v8 = vadd.f32 %v961_v6, %v555_v2  ;;  %v920_v9 = vpop.f32.mrb[1].mxu0  ;;  %v963_v10 = vpop.f32.mrb[17].mxu1  ;;  %v2217_v5 = vld [vmem:[#allocation8 + $0x1d4] ss:$8 sps:$4 sm:$0xff]   ;;  %v2215_v6 = vld [vmem:[#allocation8 + $0x1d0] ss:$8 sps:$4 sm:$0xff]  }
 0x2f8   :  { %v921_v11 = vadd.f32 %v920_v9, %v551_v3  ;;  %v964_v12 = vadd.f32 %v963_v10, %v559_v4  ;;  %v922_v13 = vpop.f32.mrb[2].mxu0  ;;  %v965_v14 = vpop.f32.mrb[18].mxu1  ;;  %v2223_v9 = vld [vmem:[#allocation8 + $0x1f4] ss:$8 sps:$4 sm:$0xff]   ;;  %v2221_v10 = vld [vmem:[#allocation8 + $0x1f0] ss:$8 sps:$4 sm:$0xff]  }
 0x2f9   :  { %vm970_vm10 = vcmp.gt.f32.partialorder %v919_v7, 0.0  ;;  %v978_v15 = vmul.f32 0.2, %v919_v7  ;;  %vm972_vm11 = vcmp.gt.f32.partialorder %v962_v8, 0.0  ;;  %v980_v55 = vmul.f32 0.2, %v962_v8 }
 0x2fa   :  { %vm971_vm12 = vcmp.gt.f32.partialorder %v921_v11, 0.0  ;;  %v979_v16 = vmul.f32 0.2, %v921_v11  ;;  %vm973_vm13 = vcmp.gt.f32.partialorder %v964_v12, 0.0  ;;  %v981_v17 = vmul.f32 0.2, %v964_v12 }
 0x2fb   :  { %v923_v18 = vadd.f32 %v922_v13, %v547_v0  ;;  %v966_v19 = vadd.f32 %v965_v14, %v555_v2  ;;  %v924_v20 = vpop.f32.mrb[3].mxu0  ;;  %v967_v21 = vpop.f32.mrb[19].mxu1  ;;  %v986_v22 = vsel %vm970_vm10, %v919_v7, %v978_v15  ;;  %v2582_v23 = vsel %vm972_vm11, %v962_v8, %v980_v55  ;;  %v2211_v0 = vld [vmem:[#allocation8 + $0x1b4] ss:$8 sps:$4 sm:$0xff]   ;;  %v2209_v2 = vld [vmem:[#allocation8 + $0x1b0] ss:$8 sps:$4 sm:$0xff]  }
 0x2fc   :  { %v925_v24 = vadd.f32 %v924_v20, %v551_v3  ;;  %v968_v25 = vadd.f32 %v967_v21, %v559_v4  ;;  %v987_v32 = vsel %vm971_vm12, %v921_v11, %v979_v16  ;;  %v989_v33 = vsel %vm973_vm13, %v964_v12, %v981_v17  ;;  %v2214_v3 = vld [vmem:[#allocation8 + $0x1c4] ss:$8 sps:$4 sm:$0xff]   ;;  %v2212_v4 = vld [vmem:[#allocation8 + $0x1c0] ss:$8 sps:$4 sm:$0xff]   ;;  %v2236_v13 = vld [vmem:[#allocation9 + $0x70] sm:$0xff]  }
 0x2fd   :  { %vm974_vm14 = vcmp.gt.f32.partialorder %v923_v18, 0.0  ;;  %v982_v26 = vmul.f32 0.2, %v923_v18  ;;  %vm976_vm15 = vcmp.gt.f32.partialorder %v966_v19, 0.0  ;;  %v984_v27 = vmul.f32 0.2, %v966_v19 }
 0x2fe   :  { %vm975_vm1 = vcmp.gt.f32.partialorder %v925_v24, 0.0  ;;  %v983_v28 = vmul.f32 0.2, %v925_v24  ;;  %vm977_vm2 = vcmp.gt.f32.partialorder %v968_v25, 0.0  ;;  %v985_v29 = vmul.f32 0.2, %v968_v25 }
 0x2ff   :  { %v990_v30 = vsel %vm974_vm14, %v923_v18, %v982_v26  ;;  %v2584_v31 = vsel %vm976_vm15, %v966_v19, %v984_v27  ;;  %v2220_v7 = vld [vmem:[#allocation8 + $0x1e4] ss:$8 sps:$4 sm:$0xff]   ;;  %v2218_v8 = vld [vmem:[#allocation8 + $0x1e0] ss:$8 sps:$4 sm:$0xff]   ;;  %v2237_v14 = vld [vmem:[#allocation9 + $0x30] sm:$0xff]  }
 0x300   :  { %v994_v34 = vpack.c.bf16 %v990_v30, %v986_v22  ;;  %v996_v35 = vpack.c.bf16 %v2584_v31, %v2582_v23  ;;  %v991_v36 = vsel %vm975_vm1, %v925_v24, %v983_v28  ;;  %v993_v37 = vsel %vm977_vm2, %v968_v25, %v985_v29  ;;  %v2234_v11 = vld [vmem:[#allocation9 + $0x68] sm:$0xff]   ;;  %v2238_v15 = vld [vmem:[#allocation9 + $0x78] sm:$0xff]  }
 0x301   :  { %v995_v38 = vpack.c.bf16 %v991_v36, %v987_v32  ;;  %v997_v40 = vpack.c.bf16 %v993_v37, %v989_v33  ;;  %v2235_v12 = vld [vmem:[#allocation9 + $0x28] sm:$0xff]   ;;  %1940 = vmatprep.subr.bf16.mxu1 %v2234_v11  ;;  %v2239_v55 = vld [vmem:[#allocation9 + $0x38] sm:$0xff]  }
 0x302   :  { %1941 = vmatpush3.bf16.msra.mxu1 %v2235_v12  ;;  %v1062_v16 = vld [vmem:[%s2632_s12] sm:$0x3] }
 0x303   :  { %1426 = vmatprep.mubr.bf16.mxu0 %v995_v38  ;;  %1942 = vmatprep.subr.bf16.mxu1 %v2236_v13  ;;  %v1067_v17 = vrot.slane %v1062_v16, %v2565_v56  ;;  %v1071_v18 = vrot.slane %v1062_v16, %v2571_v58  ;;  %v1678_v36 = vld [vmem:[#allocation2] sm:$0x1] }
 0x304   :  { %1427 = vmatmul.mubr.bf16.vlgmr.msra.gmra.mrb[4].mxu0 %v994_v34  ;;  %1681 = vperm.xlu0 %2002, %v1678_v36   ;;  %v1906_v38 = vld [vmem:[%s2634_s14] ss:$0 sm:$0xff]  ;;  %s2375_s14 = smov [#allocation11]  }
 0x305   :  { %1438 = vmatpush1.bf16.msra.mxu0 %v2176_v39  ;;  %1469 = vmatprep.mubr.bf16.mxu0 %v997_v40  ;;  %s1742_s30 = sshll.u32 %s2375_s14, 4  ;;  %s1743_s30 = int_to_ptr.vmem [resolvable:$true] %s1742_s30 }
 0x306   :  { %1439 = vmatprep.subr.bf16.mxu0 %v2181_v41  ;;  %1943 = vmatpush3.bf16.msra.mxu1 %v2237_v14  ;;  %s2336_s18 = scalar_lea.vmem %s1743_s30, 32  ;;  %p2337_p5 = scmp.lt.s32.totalorder %s1743_s30, %s1743_s30 }
 0x307   :  { %1944 = vmatprep.subr.bf16.mxu1 %v2238_v15 }
 0x309   :  { %1440 = vmatpush1.bf16.msra.mxu0 %v2179_v42 }
 0x30a   :  { %1441 = vmatprep.subr.bf16.mxu0 %v2184_v43  ;;  %1945 = vmatpush3.bf16.msra.mxu1 %v2239_v55 }
 0x30b   :  { %1974 = vmatprep.subr.bf16.mxu1 %v2372_v1 }
 0x30d   :  { %1442 = vmatpush1.bf16.msra.mxu0 %v2182_v44 }
 0x30e   :  { %1443 = vmatprep.subr.bf16.mxu0 %v2187_v45 }
 0x311   :  { %1444 = vmatpush1.bf16.msra.mxu0 %v2185_v46 }
 0x312   :  { %1445 = vmatprep.subr.bf16.mxu0 %v2190_v47 }
 0x315   :  { %1446 = vmatpush1.bf16.msra.mxu0 %v2188_v48 }
 0x316   :  { %1447 = vmatprep.subr.bf16.mxu0 %v2193_v49 }
 0x319   :  { %1448 = vmatpush1.bf16.msra.mxu0 %v2191_v50  ;;  %v1677_v50 = vld [vmem:[%s2635_s15] sm:$0x1]  ;;  %s2332_s15 = scalar_lea.vmem %s1743_s30, 16 }
 0x31a   :  { %1449 = vmatprep.subr.bf16.mxu0 %v2196_v51  ;;  %p2333_p4 = scmp.ne.s32.totalorder %s1743_s30, %s2332_s15  ;;  %p2338_p6 = scmp.lt.s32.totalorder %s2336_s18, %s2332_s15 }
 0x31c   :  { %p2339_p7 = por %p2338_p6, %p2337_p5 }
 0x31d   :  { %1450 = vmatpush1.bf16.msra.mxu0 %v2194_v52 }
 0x31e   :  { %1451 = vmatprep.subr.bf16.mxu0 %v2199_v53  ;;  %p2340_p8 = pnand %p2339_p7, %p2333_p4 }
 0x321   :  { %1452 = vmatpush1.bf16.msra.mxu0 %v2197_v54 }
 0x322   :  { %1453 = vmatprep.subr.bf16.mxu0 %v2202_v57 }
 0x325   :  { %1454 = vmatpush1.bf16.msra.mxu0 %v2200_v59 }
 0x326   :  { %1455 = vmatprep.subr.bf16.mxu0 %v2205_v60 }
 0x329   :  { %1456 = vmatpush1.bf16.msra.mxu0 %v2203_v61 }
 0x32a   :  { %1457 = vmatprep.subr.bf16.mxu0 %v2208_v62 }
 0x32d   :  { %1458 = vmatpush1.bf16.msra.mxu0 %v2206_v63 }
 0x32e   :  { %1459 = vmatprep.subr.bf16.mxu0 %v2211_v0 }
 0x331   :  { %1460 = vmatpush1.bf16.msra.mxu0 %v2209_v2 }
 0x332   :  { %1461 = vmatprep.subr.bf16.mxu0 %v2214_v3 }
 0x335   :  { %1462 = vmatpush1.bf16.msra.mxu0 %v2212_v4 }
 0x336   :  { %1463 = vmatprep.subr.bf16.mxu0 %v2217_v5 }
 0x339   :  { %1464 = vmatpush1.bf16.msra.mxu0 %v2215_v6 }
 0x33a   :  { %1465 = vmatprep.subr.bf16.mxu0 %v2220_v7 }
 0x33d   :  { %1466 = vmatpush1.bf16.msra.mxu0 %v2218_v8 }
 0x33e   :  { %1467 = vmatprep.subr.bf16.mxu0 %v2223_v9 }
 0x341   :  { %1468 = vmatpush1.bf16.msra.mxu0 %v2221_v10 }
 0x344   :  { %1470 = vmatmul.mubr.bf16.vlgmr.msra.gmra.mrb[4].mxu0 %v996_v35 }
 0x383   :  { %v1682_v51 = vpop.permute.xlu0 %1681 }
 0x384   :  { %v1687_v52 = vrot.slane %v1682_v51, %v2565_v56 }
 0x417   :  { %v1471_v19 = vpop.f32.mrb[4].mxu0 }
 0x418   :  { %v1980_v20 = vadd.f32 %v1471_v19, %v1067_v17  ;;  %v1473_v21 = vpop.f32.mrb[5].mxu0 }
 0x419   :  { %v1981_v22 = vadd.f32 %v1473_v21, %v1071_v18  ;;  %v1475_v23 = vpop.f32.mrb[6].mxu0 }
 0x41a   :  { %v1484_v24 = vmul.f32 0.2, %v1980_v20  ;;  %v1982_v25 = vadd.f32 %v1475_v23, %v1067_v17  ;;  %v1477_v26 = vpop.f32.mrb[7].mxu0  ;;  %vm1480_vm3 = vcmp.gt.f32.partialorder %v1980_v20, 0.0 }
 0x41b   :  { %v1485_v27 = vmul.f32 0.2, %v1981_v22  ;;  %v1983_v28 = vadd.f32 %v1477_v26, %v1071_v18  ;;  %vm1481_vm4 = vcmp.gt.f32.partialorder %v1981_v22, 0.0 }
 0x41c   :  { %vm1482_vm5 = vcmp.gt.f32.partialorder %v1982_v25, 0.0  ;;  %v1486_v29 = vmul.f32 0.2, %v1982_v25  ;;  %v1488_v31 = vsel %vm1480_vm3, %v1980_v20, %v1484_v24 }
 0x41d   :  { %vm1483_vm6 = vcmp.gt.f32.partialorder %v1983_v28, 0.0  ;;  %v1487_v30 = vmul.f32 0.2, %v1983_v28  ;;  %v1489_v58 = vsel %vm1481_vm4, %v1981_v22, %v1485_v27 }
 0x41e   :  { %v1490_v32 = vsel %vm1482_vm5, %v1982_v25, %v1486_v29 }
 0x41f   :  { %v1492_v33 = vpack.c.bf16 %v1490_v32, %v1488_v31  ;;  %v1491_v34 = vsel %vm1483_vm6, %v1983_v28, %v1487_v30 }
 0x420   :  { %v1493_v35 = vpack.c.bf16 %v1491_v34, %v1489_v58 }
 0x422   :  { %1661 = vmatprep.mubr.bf16.mxu1 %v1493_v35 }
 0x423   :  { %1662 = vmatmul.mubr.bf16.vlgmr.msra.gmra.mrb[20].mxu1 %v1492_v33 }
 0x424   :  { %1976 = vmatprep.mubr.msk.bf16.mxu1 %vm2373_vm0, %v2372_v1  ;;  %vm1734_vm0 = vcmask 122880  }
 0x4f6   :  { %v1946_v37 = vpop.f32.mrb[20].mxu1 }
 0x4f7   :  { %v1947_v39 = vpop.f32.mrb[21].mxu1 }
 0x4f8   :  { %v1948_v40 = vadd.f32 %v1947_v39, %v1946_v37  ;;  %v1949_v41 = vpop.f32.mrb[22].mxu1 }
 0x4f9   :  { %v1950_v42 = vpop.f32.mrb[23].mxu1 }
 0x4fa   :  { %v1664_v43 = vadd.f32 %v1948_v40, %v1906_v38  ;;  %v1951_v44 = vadd.f32 %v1950_v42, %v1949_v41 }
 0x4fc   :  { %v1672_v45 = vmul.f32 0.2, %v1664_v43  ;;  %v1667_v46 = vadd.f32 %v1951_v44, %v1906_v38  ;;  %vm1670_vm7 = vcmp.gt.f32.partialorder %v1664_v43, 0.0 }
 0x4fe   :  { %vm1671_vm8 = vcmp.gt.f32.partialorder %v1667_v46, 0.0  ;;  %v1673_v47 = vmul.f32 0.2, %v1667_v46  ;;  %v1674_v48 = vsel %vm1670_vm7, %v1664_v43, %v1672_v45 }
 0x500   :  { %v1675_v1 = vsel %vm1671_vm8, %v1667_v46, %v1673_v47 }
 0x501   :  { %v1676_v49 = vpack.c.bf16 %v1675_v1, %v1674_v48 }
 0x503   :  { %1975 = vmatpush3.bf16.xpose.msra.mxu1 %v1676_v49 }
 0x50a   :  { %1977 = vmatmul.mubr.bf16.vlgmr.msra.gmra.mrb[24].mxu1 %v1677_v50 }
 0x5dd   :  { %v1722_v53 = vpop.f32.mrb[24].mxu1 }
 0x5de   :  { %v1723_v54 = vadd.f32 %v1722_v53, %v1687_v52  ;;  %v1978_v57 = vpop.f32.mrb[25].mxu1 }
 0x5df   :  { %v1725_v59 = vpop.f32.mrb[26].mxu1 }
 0x5e0   :  { %v1728_v60 = vsub.f32 0.0, %v1723_v54  ;;  %v1979_v61 = vpop.f32.mrb[27].mxu1 }
 0x5e2   :  { %v1729_v62 = vmul.f32 1.442695, %v1728_v60 }
 0x5e4   :  { %2240 = vpow2.f32 %v1729_v62 }
 0x5ee   :  { %v2241_v63 = vpop.eup %2240 }
 0x5ef   :  { %v1731_v0 = vadd.f32 1.0, %v2241_v63 }
 0x5f1   :  { %2242 = vrcp.f32 %v1731_v0 }
 0x5fb   :  { %v2243_v2 = vpop.eup %2242 }
 0x5fc   :  { %1735 = vst.msk [vmem:[#allocation11] sm:$0x1] %vm1734_vm0, %v2243_v2 }
 0x5fd   :  { %2343 = shalt.err (!%p2340_p8)
}
 0x5fe   :  { %s2344_s19 = scalar_lea.hbm %s2637_s17, 16 }
 0x5ff   :  { %p2345_p9 = scmp.ne.s32.totalorder %s2637_s17, %s2344_s19  ;;  %p2348_p10 = scmp.lt.u32.totalorder %s2344_s19, %s2637_s17 }
 0x601   :  { %p2350_p11 = pnand %p2348_p10, %p2345_p9 }
 0x603   :  { %2353 = shalt.err (!%p2350_p11)
}
 0x604   :  { %1745 = dma.vmem_to_hbm [thread:$0]  %s1743_s30, 16, %s2637_s17, [#allocation5]  }
 0x605   :  { %2360 = dma.done.wait [#allocation5], 16  }
 0x606   :  { %2361 = vsyncadd [#allocation5], 4294967280 }
 0x607   :  { %1749 = vsyncpa [#allocation4], 1 }
 0x608   :  { %1750 = vsyncpa [#allocation7], 1 }
 0x609   :  { %1751 = vsyncpa [#allocation10], 1 }
 0x60a   :  { %1752 = vsyncpa [#allocation5], 1 }

</bundles_post_ra>
